<compile_context>
chip_gen: v6e
topology: v6e:2x2x1
jax: 0.10.0
libtpu: 0.0.40
codegen_flags: <defaults>
</compile_context>

<pallas_src>
import jax
import jax.numpy as jnp
import numpy as np
from jax.experimental import pallas as pl
from jax.experimental.pallas import tpu as pltpu

_LANE = 128                 # vreg lane width: last dim of lane-dense blocks
_FAST_PATH_BYTES = 1 << 20  # below this, let XLA fuse the multiply
_BLOCK_BYTES = 2 << 20      # ~2 MiB per operand block (v5e/v6e/v7x safe)


def _sublane_multiple(*dtypes):
    """Row-block multiple: packed dtypes tile as (8*pack, 128) sublanes."""
    min_itemsize = min(jnp.dtype(d).itemsize for d in dtypes)
    return max(8, 32 // max(1, min_itemsize))


def _round_up(a, m):
    return ((a + m - 1) // m) * m


def _mul_kernel(x_ref, b_ref, o_ref):
    # One VPU pass. Operands arrive in their native dtypes (cast here is free
    # under the memory-bound regime) and a small buf block ((1,1) or (1,C,1))
    # is broadcast in-register instead of being materialized in HBM.
    o_ref[...] = (x_ref[...] * b_ref[...]).astype(o_ref.dtype)


def _compiler_params():
    return pltpu.CompilerParams(
        dimension_semantics=("parallel",),     # shards the grid across both TCs on v7x
        allow_input_fusion=[True, True],       # fuse wrapper reshapes into the call
    )


def buffer_forward(x, buf, *, min_pallas_bytes=_FAST_PATH_BYTES,
                   block_bytes=_BLOCK_BYTES):
    """Pallas implementation of Buffer.forward: x * buf (with broadcasting)."""
    x = jnp.asarray(x)
    buf = jnp.asarray(buf)
    out_shape = jnp.broadcast_shapes(x.shape, buf.shape)
    out_dtype = jnp.result_type(x.dtype, buf.dtype)
    total = int(np.prod(out_shape, dtype=np.int64)) if out_shape else 1
    out_bytes = total * jnp.dtype(out_dtype).itemsize

    # ---- small-input fast path: launch + DMA overhead would dominate. -------
    if total == 0 or out_bytes < min_pallas_bytes:
        return (x * buf).astype(out_dtype)

    # The module's activation `x` is expected to be full-size.
    if x.shape != out_shape:
        # TODO(synk): x-side broadcasting (x smaller than buf) falls back to XLA.
        return (x * buf).astype(out_dtype)

    rank = len(out_shape)
    mult = _sublane_multiple(x.dtype, buf.dtype, out_dtype)
    max_item = max(jnp.dtype(d).itemsize for d in (x.dtype, buf.dtype, out_dtype))

    # Align buf's shape to the output rank (numpy/PyTorch right-aligned rule).
    bshape = (1,) * (rank - buf.ndim) + tuple(buf.shape)
    nonunit = [i for i in range(rank) if bshape[i] != 1]

    # ---- path 1: dense same-shape buf, or scalar buf -> 2-D lane-dense tiling
    if (buf.shape == out_shape or not nonunit) and total % _LANE == 0:
        cols = _LANE
        rows = total // cols
        block_rows = max(mult, (block_bytes // (cols * max_item)) // mult * mult)
        # at least 2 blocks for non-trivial inputs (v7x megacore), ragged last
        # block handled by masked stores -- no padding / output slicing needed.
        br = min(block_rows, max(mult, _round_up(pl.cdiv(rows, 2), mult)))
        grid = pl.cdiv(rows, br)

        x2 = x.reshape(rows, cols)              # pure collapse -> bitcast
        if buf.shape == out_shape:
            b2 = buf.reshape(rows, cols)
            b_spec = pl.BlockSpec((br, cols), lambda i: (i, 0))
        else:                                   # scalar buf: broadcast in-kernel
            b2 = buf.reshape(1, 1)
            b_spec = pl.BlockSpec((1, 1), lambda i: (0, 0))

        out2 = pl.pallas_call(
            _mul_kernel,
            out_shape=jax.ShapeDtypeStruct((rows, cols), out_dtype),
            grid=(grid,),
            in_specs=[pl.BlockSpec((br, cols), lambda i: (i, 0)), b_spec],
            out_specs=pl.BlockSpec((br, cols), lambda i: (i, 0)),
            compiler_params=_compiler_params(),
        )(x2, b2)
        return out2.reshape(out_shape)

    # ---- path 2: buf broadcasts over leading/trailing dims (e.g. (1,C,1,1)) -
    # Keep buf un-broadcast; the kernel broadcasts it over the x tile, so the
    # full-size buf copy (extra ~2x HBM traffic) never exists.
    if nonunit:
        k0, k1 = min(nonunit), max(nonunit) + 1
        if all(bshape[i] == out_shape[i] for i in range(k0, k1)):
            outer = int(np.prod(out_shape[:k0], dtype=np.int64)) if k0 else 1
            mid = int(np.prod(out_shape[k0:k1], dtype=np.int64))
            inner = int(np.prod(out_shape[k1:], dtype=np.int64)) if k1 < rank else 1
            tile_bytes = mid * inner * max_item
            if tile_bytes <= block_bytes and outer >= 2:
                bo = max(1, block_bytes // tile_bytes)
                bo = min(bo, max(1, pl.cdiv(outer, 2)))   # >= 2 blocks (megacore)
                grid = pl.cdiv(outer, bo)
                x3 = x.reshape(outer, mid, inner)          # bitcast
                b3 = buf.reshape(1, mid, 1)                # tiny, stays in VMEM
                out3 = pl.pallas_call(
                    _mul_kernel,
                    out_shape=jax.ShapeDtypeStruct((outer, mid, inner), out_dtype),
                    grid=(grid,),
                    in_specs=[
                        pl.BlockSpec((bo, mid, inner), lambda i: (i, 0, 0)),
                        pl.BlockSpec((1, mid, 1), lambda i: (0, 0, 0)),
                    ],
                    out_specs=pl.BlockSpec((bo, mid, inner), lambda i: (i, 0, 0)),
                    compiler_params=_compiler_params(),
                )(x3, b3)
                return out3.reshape(out_shape)

    # ---- fallback: rare layouts (ragged totals, interleaved broadcast dims,
    # single-row outer) -- correct, just not hand-tiled.
    # TODO(synk): these shapes fall back to XLA's fused elementwise multiply.
    return (x * buf).astype(out_dtype)


if __name__ == "__main__":
    key = jax.random.PRNGKey(0)
    kx, kb, kc, kd = jax.random.split(key, 4)

    # NCHW-style input, small shapes: batch=2, channels=4, spatial=16x16
    x = jax.random.normal(kx, (2, 4, 16, 16), jnp.float32)
    buf = jax.random.normal(kb, (2, 4, 16, 16), jnp.float32)

    # 1) dense same-shape buffer (force the Pallas path even at this tiny size)
    out = jax.block_until_ready(buffer_forward(x, buf, min_pallas_bytes=0))
    ref = jax.block_until_ready(x * buf)
    assert out.shape == ref.shape and out.dtype == ref.dtype, (out.shape, out.dtype)
    assert np.allclose(np.asarray(out), np.asarray(ref), rtol=1e-6, atol=1e-6)

    # 2) per-channel buffer (1,C,1,1): broadcast happens inside the kernel
    buf_c = jax.random.normal(kc, (1, 4, 1, 1), jnp.float32)
    out_c = jax.block_until_ready(buffer_forward(x, buf_c, min_pallas_bytes=0))
    ref_c = jax.block_until_ready(x * buf_c)
    assert out_c.shape == ref_c.shape, out_c.shape
    assert np.allclose(np.asarray(out_c), np.asarray(ref_c), rtol=1e-6, atol=1e-6)

    # 3) scalar buffer
    buf_s = jax.random.normal(kd, (1, 1, 1, 1), jnp.float32)
    out_s = jax.block_until_ready(buffer_forward(x, buf_s, min_pallas_bytes=0))
    ref_s = jax.block_until_ready(x * buf_s)
    assert np.allclose(np.asarray(out_s), np.asarray(ref_s), rtol=1e-6, atol=1e-6)

    # 4) mixed dtype: bf16 activation, f32 buffer (native-dtype streaming + in-kernel cast)
    x_bf = x.astype(jnp.bfloat16)
    out_m = jax.block_until_ready(buffer_forward(x_bf, buf, min_pallas_bytes=0))
    ref_m = jax.block_until_ready(x_bf * buf)
    assert out_m.dtype == ref_m.dtype, out_m.dtype
    assert np.allclose(np.asarray(out_m), np.asarray(ref_m), rtol=1e-6, atol=1e-6)

    # 5) default call: tiny input takes the XLA fast path
    out_f = jax.block_until_ready(buffer_forward(x, buf))
    assert np.allclose(np.asarray(out_f), np.asarray(ref), rtol=1e-6, atol=1e-6)

    print("KERNEL_OK")
</pallas_src>

<mosaic_0001>
module attributes {stable_mosaic.version = 11 : i64} {
  func.func @_mul_kernel(%arg0: i32, %arg1: memref<8x128xf32, #tpu.memory_space<vmem>>, %arg2: memref<8x128xf32, #tpu.memory_space<vmem>>, %arg3: memref<8x128xf32, #tpu.memory_space<vmem>>) attributes {dimension_semantics = [#tpu.dimension_semantics<parallel>], iteration_bounds = array<i64: 2>, scalar_prefetch = 0 : i64, scratch_operands = 0 : i64, tpu.core_type = #tpu.core_type<tc>, window_params = [{transform_indices = @transform_0, window_bounds = array<i64: 8, 128>}, {transform_indices = @transform_1, window_bounds = array<i64: 8, 128>}, {transform_indices = @transform_2, window_bounds = array<i64: 8, 128>}]} {
    %c0 = arith.constant 0 : index
    %c0_0 = arith.constant 0 : index
    %0 = vector.load %arg1[%c0, %c0_0] : memref<8x128xf32, #tpu.memory_space<vmem>>, vector<8x128xf32>
    %c0_1 = arith.constant 0 : index
    %c0_2 = arith.constant 0 : index
    %1 = vector.load %arg2[%c0_1, %c0_2] : memref<8x128xf32, #tpu.memory_space<vmem>>, vector<8x128xf32>
    %2 = arith.mulf %0, %1 : vector<8x128xf32>
    %c0_3 = arith.constant 0 : index
    %c0_4 = arith.constant 0 : index
    %3 = vector.load %arg3[%c0_3, %c0_4] : memref<8x128xf32, #tpu.memory_space<vmem>>, vector<8x128xf32>
    tpu.vector_store %arg3[%c0_3, %c0_4], %2 {strides = array<i32>} : memref<8x128xf32, #tpu.memory_space<vmem>>, vector<8x128xf32>,
    return
  }
  func.func @transform_0(%arg0: i32) -> (i32, i32) {
    %c0_i32 = arith.constant 0 : i32
    %c0_i32_0 = arith.constant 0 : i32
    return %arg0, %c0_i32 : i32, i32
  }
  func.func @transform_1(%arg0: i32) -> (i32, i32) {
    %c0_i32 = arith.constant 0 : i32
    %c0_i32_0 = arith.constant 0 : i32
    return %arg0, %c0_i32 : i32, i32
  }
  func.func @transform_2(%arg0: i32) -> (i32, i32) {
    %c0_i32 = arith.constant 0 : i32
    %c0_i32_0 = arith.constant 0 : i32
    return %arg0, %c0_i32 : i32, i32
  }
}

</mosaic_0001>

<bundles_post_ra>
// kernel: tpu_custom_call.1
= control target key start
LH: loop header
LB: loop body
LE: loop exit
PB: predicated region body
PF: predicated region fallthrough
CT: control target
= control target key end

     0   :  { %7 = vsyncpa [#allocation3], 0  ;;  %s711_s0 = inlined_call_operand.hbm [shape: f32[16,128], index: 0, kind: input, shape index: {}]   ;;  %s712_s1 = inlined_call_operand.hbm [shape: f32[16,128], index: 1, kind: input, shape index: {}]   ;;  %s713_s2 = inlined_call_operand.hbm [shape: f32[16,128], index: 2, kind: output, shape index: {}]  }
   0x1   :  { %9 = vsyncpa [#allocation3 + $0x1], 0 }
   0x2   :  { %10 = vsyncpa [#allocation6], 0 }
   0x3   :  { %12 = vsyncpa [#allocation6 + $0x1], 0 }
   0x4   :  { %13 = vsyncpa [#allocation4], 0 }
   0x5   :  { %15 = vsyncpa [#allocation4 + $0x1], 0  ;;  %s517_s9 = smov 0   ;;  %s519_s10 = smov 0  }
   0x6   :  { %s521_s11 = smov 0   ;;  %s523_s12 = smov 0  }
   0x7 LB: > { %s538_s13 = sadd.s32 4294967295, %s497_s12   ;;  %s307_s14 = sadd.s32 4294967294, %s497_s12   ;;  %s497_s12 = sphi %s523_s12, %s732_s12   ;;  %s493_s11 = sphi %s521_s11, %s731_s11   ;;  %s489_s10 = sphi %s519_s10, %s730_s10   ;;  %s485_s9 = sphi %s517_s9, %s729_s9  }
   0x8   : > { %s542_s15 = sadd.s32 1, %s497_s12   ;;  %s28_s16 = sadd.s32 1, %s493_s11 }
   0x9   : > { %s25_s17 = ssub.s32 %s497_s12, %s542_s15  ;;  %p35_p0 = scmp.ne.s32.totalorder %s493_s11, %s489_s10 }
   0xa   : > { %p26_p1 = scmp.eq.s32.totalorder %s25_s17, 0  ;;  %p36_p2 = scmp.eq.s32.totalorder %s497_s12, 0 }
   0xb   : > { %p41_p3 = scmp.ne.s32.totalorder %s489_s10, %s485_s9  ;;  %p42_p4 = scmp.eq.s32.totalorder %s538_s13, 0 }
   0xc   : > { %s554_s18 = scalar_select %p26_p1, %s493_s11, %s28_s16  }
   0xd   : > { %p556_p5 = por %p36_p2, %p35_p0  ;;  %p560_p6 = por %p42_p4, %p41_p3 }
   0xe   : > { %p91_p7 = scmp.eq.s32.totalorder %s538_s13, 1  ;;  %p97_p8 = scmp.eq.s32.totalorder %s307_s14, 1 }
   0xf   : > { %s717_s20 = scalar_select %p560_p6, 1, 0 }
  0x10   : > { %p339_p10 = scmp.lt.s32.totalorder %s497_s12, 2  ;;  %p567_p11 = por %p91_p7, %p35_p0 }
  0x11   : > { %p571_p12 = por %p97_p8, %p41_p3  ;;  %s576_s23 = sand.u32 1, %s493_s11  }
  0x12   : > { %s718_s21 = scalar_select %p567_p11, 1, 0 }
  0x13   : > { %s719_s22 = scalar_select %p571_p12, 1, 0 }
  0x14   : > { %s311_s24 = sshll.u32 %s497_s12, 7  ;;  %s310_s25 = sshll.u32 %s576_s23, 3 }
  0x15   : > { %s585_s28 = scalar_lea.hbm %s711_s0, %s311_s24  ;;  %s121_s29 = scalar_lea.vmem [#allocation2], %s310_s25 }
  0x16   : > { %s128_s30 = sshll.u32 %s121_s29, 4  ;;  %p591_p13 = pnand %p339_p10, %p556_p5  ;;  %s595_s30 = int_to_ptr.vmem [resolvable:$true] %s128_s30 }
  0x17   : > { %s118_s4 = scalar_lea.sflag [#allocation3], %s576_s23  ;;  %s373_s5 = scalar_lea.hbm %s585_s28, 128 }
  0x18   : > { %p374_p2 = scmp.ne.s32.totalorder %s585_s28, %s373_s5  ;;  %p375_p3 = pneg %p591_p13 }
  0x19   : > { %s378_s8 = scalar_lea.hbm %s711_s0, 256  ;;  %p379_p5 = scmp.lt.s32.totalorder %s585_s28, %s711_s0 }
  0x1a   : > { %p376_p4 = pnand %p375_p3, %p374_p2  ;;  %p380_p8 = scmp.lt.s32.totalorder %s378_s8, %s373_s5 }
  0x1c   : > { %p377_p7 = pneg %p376_p4  ;;  %p381_p10 = por %p380_p8, %p379_p5 }
  0x1e   : > { %p382_p9 = pnand %p381_p10, %p377_p7 }
  0x20   : > { %385 = shalt.err (!%p382_p9)
}
  0x21   : > { %s386_s17 = scalar_lea.vmem %s595_s30, 128  ;;  %s499_s19 = smov [#allocation2]  }
  0x22   : > { %p387_p0 = scmp.ne.s32.totalorder %s595_s30, %s386_s17  ;;  %s391_s26 = sshll.u32 %s499_s19, 4  ;;  %s392_s26 = int_to_ptr.vmem [resolvable:$false] %s391_s26 }
  0x23   : > { %s393_s27 = scalar_lea.vmem %s392_s26, 256  ;;  %p394_p1 = scmp.lt.s32.totalorder %s595_s30, %s392_s26 }
  0x24   : > { %p389_p2 = pnand %p387_p0, %p375_p3  ;;  %p395_p12 = scmp.lt.s32.totalorder %s393_s27, %s386_s17 }
  0x26   : > { %p390_p4 = pneg %p389_p2  ;;  %p396_p11 = por %p395_p12, %p394_p1 }
  0x28   : > { %p397_p5 = pnand %p396_p11, %p390_p4 }
  0x2a   : > { %400 = shalt.err (!%p397_p5)
}
  0x2b   : > { %331 = dma.hbm_to_vmem [thread:$0]  (!%p591_p13), %s585_s28, 128, %s595_s30, %s118_s4  }
  0x2c   : > { %p721_p9 = scmp.lt.s32.totalorder %s497_s12, 3  ;;  %p722_p0 = scmp.ge.s32.totalorder %s497_s12, 1 }
  0x2d   : > { %s637_s7 = scalar_lea.hbm %s712_s1, %s311_s24  ;;  %s139_s8 = scalar_lea.vmem [#allocation5], %s310_s25 }
  0x2e   : > { %p628_p7 = pnand %p722_p0, %p721_p9  ;;  %s146_s14 = sshll.u32 %s139_s8, 4  ;;  %s147_s14 = int_to_ptr.vmem [resolvable:$true] %s146_s14 }
  0x2f   : > { %s136_s28 = scalar_lea.sflag [#allocation6], %s576_s23  ;;  %s401_s30 = scalar_lea.hbm %s637_s7, 128 }
  0x30   : > { %s723_s29 = scalar_select %p628_p7, 1, 0 }
  0x31   : > { %p402_p11 = scmp.ne.s32.totalorder %s637_s7, %s401_s30  ;;  %s406_s17 = scalar_lea.hbm %s712_s1, 256 }
  0x32   : > { %p407_p8 = scmp.lt.s32.totalorder %s637_s7, %s712_s1  ;;  %p408_p10 = scmp.lt.s32.totalorder %s406_s17, %s401_s30 }
  0x33   : > { %p404_p12 = pnand %p402_p11, %p375_p3 }
  0x34   : > { %p409_p2 = por %p408_p10, %p407_p8 }
  0x35   : > { %p405_p1 = pneg %p404_p12 }
  0x37   : > { %p410_p4 = pnand %p409_p2, %p405_p1 }
  0x39   : > { %413 = shalt.err (!%p410_p4)
}
  0x3a   : > { %s414_s25 = scalar_lea.vmem %s147_s14, 128  ;;  %s500_s23 = smov [#allocation5]  }
  0x3b   : > { %p415_p5 = scmp.ne.s32.totalorder %s147_s14, %s414_s25  ;;  %s419_s26 = sshll.u32 %s500_s23, 4  ;;  %s420_s26 = int_to_ptr.vmem [resolvable:$false] %s419_s26 }
  0x3c   : > { %s421_s27 = scalar_lea.vmem %s420_s26, 256  ;;  %p422_p11 = scmp.lt.s32.totalorder %s147_s14, %s420_s26 }
  0x3d   : > { %p417_p9 = pnand %p415_p5, %p375_p3  ;;  %p423_p12 = scmp.lt.s32.totalorder %s421_s27, %s414_s25 }
  0x3f   : > { %p418_p0 = pneg %p417_p9  ;;  %p424_p6 = por %p423_p12, %p422_p11 }
  0x41   : > { %p425_p7 = pnand %p424_p6, %p418_p0 }
  0x43   : > { %428 = shalt.err (!%p425_p7)
}
  0x44   : > { %334 = dma.hbm_to_vmem [thread:$0]  (!%p591_p13), %s637_s7, 128, %s147_s14, %s136_s28  }
  0x45   : > { %p724_p1 = scmp.ne.s32.totalorder %s723_s29, 0 }
  0x46   : > { %s663_s5 = sand.u32 (!%p724_p1), 1, %s489_s10   ;;  %p725_p3 = scmp.ne.s32.totalorder (!%p724_p1), %s717_s20, 0 }
  0x47   : > { %155 = sbr.rel (%p724_p1) target bundleno = 104 (0x68), region = 28  ;;  %s315_s6 = sshll.u32 (!%p724_p1), %s663_s5, 3 }
  0x48   : > { %s158_s8 = scalar_lea.sflag (!%p724_p1), [#allocation3], %s663_s5  ;;  %s161_s30 = scalar_lea.vmem (!%p724_p1), [#allocation2], %s315_s6 }
  0x4c   : > { %472 = dma.done.wait (%p725_p3), %s158_s8, 128  }
  0x4d   : > { %474 = vsyncadd (%p725_p3), %s158_s8, 4294967168  ;;  %s167_s3 = scalar_lea.sflag [#allocation6], %s663_s5  ;;  %s170_s7 = scalar_lea.vmem [#allocation5], %s315_s6 }
  0x4e   : > { %476 = dma.done.wait (%p725_p3), %s167_s3, 128  }
  0x4f   : > { %478 = vsyncadd (%p725_p3), %s167_s3, 4294967168  ;;  %s195_s29 = scalar_lea.vmem [#allocation7], %s315_s6  ;;  %s319_s28 = sshll.u32 %s538_s13, 7  ;;  %v196_v0 = vld [vmem:[%s161_s30] sm:$0xff]  ;;  %v197_v1 = vld [vmem:[%s170_s7] sm:$0xff] }
  0x50   : > { %s214_s14 = sshll.u32 %s195_s29, 4  ;;  %v198_v2 = vmul.f32 %v197_v1, %v196_v0  ;;  %s212_s17 = scalar_lea.hbm %s713_s2, %s319_s28  ;;  %s215_s14 = int_to_ptr.vmem [resolvable:$true] %s214_s14 }
  0x51   : > { %s201_s24 = scalar_lea.sflag [#allocation4], %s663_s5  ;;  %s429_s19 = scalar_lea.vmem %s215_s14, 128 }
  0x52   : > { %199 = vst [vmem:[%s195_s29] sm:$0xff] %v198_v2  ;;  %p430_p6 = scmp.ne.s32.totalorder %s215_s14, %s429_s19  ;;  %p726_p13 = scmp.ne.s32.totalorder %s718_s21, 0 }
  0x53   : > { %s501_s20 = smov [#allocation7]  }
  0x54   : > { %p431_p7 = pnand %p430_p6, %p726_p13  ;;  %s433_s25 = sshll.u32 %s501_s20, 4  ;;  %s434_s25 = int_to_ptr.vmem [resolvable:$false] %s433_s25 }
  0x55   : > { %s435_s23 = scalar_lea.vmem %s434_s25, 256  ;;  %p436_p10 = scmp.lt.s32.totalorder %s215_s14, %s434_s25 }
  0x56   : > { %p432_p8 = pneg %p431_p7  ;;  %p437_p2 = scmp.lt.s32.totalorder %s435_s23, %s429_s19 }
  0x58   : > { %p438_p4 = por %p437_p2, %p436_p10 }
  0x5a   : > { %p439_p5 = pnand %p438_p4, %p432_p8 }
  0x5c   : > { %442 = shalt.err (!%p439_p5)
}
  0x5d   : > { %s443_s13 = scalar_lea.hbm %s212_s17, 128  ;;  %s447_s5 = scalar_lea.hbm %s713_s2, 256 }
  0x5e   : > { %p444_p9 = scmp.ne.s32.totalorder %s212_s17, %s443_s13  ;;  %p448_p12 = scmp.lt.s32.totalorder %s212_s17, %s713_s2 }
  0x5f   : > { %p449_p1 = scmp.lt.s32.totalorder %s447_s5, %s443_s13 }
  0x60   : > { %p445_p0 = pnand %p444_p9, %p726_p13 }
  0x61   : > { %p450_p3 = por %p449_p1, %p448_p12 }
  0x62   : > { %p446_p11 = pneg %p445_p0 }
  0x64   : > { %p451_p6 = pnand %p450_p3, %p446_p11 }
  0x66   : > { %454 = shalt.err (!%p451_p6)
}
  0x67   : > { %326 = dma.vmem_to_hbm [thread:$0]  (%p726_p13), %s215_s14, 128, %s212_s17, %s201_s24  }
  0x68 PF: > { %s226_s30 = sand.u32 1, %s485_s9   ;;  %p727_p7 = scmp.ne.s32.totalorder %s719_s22, 0 }
  0x69   : > { %p728_p8 = scmp.ge.s32.totalorder %s497_s12, 2  ;;  %s227_s3 = scalar_lea.sflag [#allocation4], %s226_s30 }
  0x6b   : > { %p336_p10 = pnand %p728_p8, %p727_p7 }
  0x6d   : > { %p337_p2 = pneg %p336_p10 }
  0x6f   : > { %480 = dma.done.wait (%p337_p2), %s227_s3, 128  }
  0x70   : > { %482 = vsyncadd (%p337_p2), %s227_s3, 4294967168  ;;  %p18_p4 = scmp.ge.s32.totalorder %s542_s15, 4   ;;  %s729_s9 = smov %s489_s10 }
  0x71   : > { %s730_s10 = smov %s493_s11  ;;  %s731_s11 = smov %s554_s18 }
  0x72   : > { %s732_s12 = smov %s542_s15  ;;  %20 = sbr.rel (!%p18_p4) target bundleno = 7 (0x7), region = 86 }
  0x77   :  { %232 = vsyncpa [#allocation3], 1 }
  0x78   :  { %234 = vsyncpa [#allocation3 + $0x1], 1 }
  0x79   :  { %235 = vsyncpa [#allocation6], 1 }
  0x7a   :  { %237 = vsyncpa [#allocation6 + $0x1], 1 }
  0x7b   :  { %238 = vsyncpa [#allocation4], 1 }
  0x7c   :  { %240 = vsyncpa [#allocation4 + $0x1], 1 }

</bundles_post_ra>
